<compile_context>
chip_gen: v7x
topology: tpu7x:2x2x1
jax: 0.10.0
libtpu: 0.0.40
codegen_flags: <defaults>
</compile_context>

<pallas_src>
import numpy as np
import jax
import jax.numpy as jnp
from jax.experimental import pallas as pl
from jax.experimental.pallas import tpu as pltpu


def _round_up(x, m):
    return ((x + m - 1) // m) * m


# ----------------------------- Pallas kernel --------------------------------
def critic_neg_kernel(
    x_ref,                                    # (K_pad, TB)  bf16  fused layer-0 input
    w0_ref, b0_ref,                           # bottom layer 0 (num/act linears fused in)
    w1_ref, b1_ref,                           # bottom layer 1
    wt0_ref, bt0_ref, wt1_ref, bt1_ref,       # tower hidden layers
    wo_ref, bo_ref,                           # tower output layer (-> 1)
    out_ref,                                  # (1, TB) f32
):
    f32 = jnp.float32
    bf16 = jnp.bfloat16

    def layer(w_ref, b_ref, x):
        # W^T @ x  on the MXU (f32 accumulate), bias + ReLU in f32 on the VPU.
        h = jnp.dot(w_ref[...], x, preferred_element_type=f32) + b_ref[...]
        return jnp.maximum(h, 0.0)

    h = layer(w0_ref, b0_ref, x_ref[...]).astype(bf16)      # (b0, TB)
    h = layer(w1_ref, b1_ref, h).astype(bf16)               # (b1, TB)
    t = layer(wt0_ref, bt0_ref, h).astype(bf16)             # (t0, TB)
    t = layer(wt1_ref, bt1_ref, t).astype(bf16)             # (t1, TB)

    o = jnp.dot(wo_ref[...], t, preferred_element_type=f32) + bo_ref[...]   # (1, TB)
    out_ref[...] = -jnp.maximum(o, 0.0)                     # lane-dense store


# ----------------------------- input construction ----------------------------
def _fused_input(categorical_x, numerical_x, action, emb_table, cfg):
    """Embedding gather + concat([emb, numerical, action]) as the fused layer-0
    input, zero-padded on the feature axis to a multiple of 8 (sublane tile)."""
    B = categorical_x.shape[0]
    F = len(cfg["field_dims"])
    E = cfg["embed_dim"]
    K_in = F * E + cfg["numerical_num"] + 1
    K_pad = _round_up(K_in, 8)

    # EmbeddingLayer: offsets + single-table gather -> (B, F*E).
    # TODO(synk): data-dependent row gather stays in plain JAX (jnp.take); an
    # in-kernel gather via scalar-prefetched indices is possible but not needed here.
    offsets = jnp.asarray(
        np.concatenate(([0], np.cumsum(cfg["field_dims"])[:-1])), jnp.int32)
    emb_cat = jnp.take(emb_table, categorical_x + offsets[None, :],
                       axis=0).reshape(B, F * E)

    x = jnp.concatenate(
        [emb_cat.astype(jnp.float32),
         numerical_x.astype(jnp.float32),
         action.astype(jnp.float32)], axis=1)                # (B, K_in)
    if K_pad > K_in:
        x = jnp.pad(x, ((0, 0), (0, K_pad - K_in)))
    return x                                                 # (B, K_pad) f32


# ----------------------------- wrapper ---------------------------------------
def critic_neg_forward(categorical_x, numerical_x, action, kparams, cfg, *, tb_max=4096):
    """CriticNeg forward.  Embedding gather in JAX glue, the rest in one Pallas kernel."""
    B = categorical_x.shape[0]

    x = _fused_input(categorical_x, numerical_x, action, kparams["emb_table"], cfg)
    K_pad = x.shape[1]

    # Feature-major (K_pad, B_pad) bf16 with the batch tile on the 128-wide lane axis.
    B_pad = _round_up(B, 128)
    TB = min(tb_max, B_pad)
    B_pad = _round_up(B, TB)
    x_t = x.T.astype(jnp.bfloat16)                           # (K_pad, B)
    if B_pad > B:
        x_t = jnp.pad(x_t, ((0, 0), (0, B_pad - B)))
    n_tiles = B_pad // TB

    weight_keys = ["w0", "b0", "w1", "b1", "wt0", "bt0", "wt1", "bt1", "wo", "bo"]
    weights = [kparams[k] for k in weight_keys]

    # Activation blocks stream over the batch; weights are full-array blocks
    # with a constant index_map so they are DMA'd once and stay VMEM-resident.
    in_specs = [pl.BlockSpec((K_pad, TB), lambda i: (0, i))] + [
        pl.BlockSpec(w.shape, lambda i: (0, 0)) for w in weights
    ]
    out_spec = pl.BlockSpec((1, TB), lambda i: (0, i))

    b0d, b1d = cfg["bottom_mlp_dims"]
    t0d, t1d = cfg["tower_mlp_dims"]
    flops = 2 * B_pad * (K_pad * b0d + b0d * b1d + b1d * t0d + t0d * t1d + t1d * 1)
    weight_bytes = sum(int(np.prod(w.shape)) * w.dtype.itemsize for w in weights)
    bytes_accessed = int(x_t.size) * 2 + B_pad * 4 + weight_bytes
    cost = pl.CostEstimate(flops=int(flops), transcendentals=0,
                           bytes_accessed=int(bytes_accessed))

    out = pl.pallas_call(
        critic_neg_kernel,
        out_shape=jax.ShapeDtypeStruct((1, B_pad), jnp.float32),
        grid=(n_tiles,),
        in_specs=in_specs,
        out_specs=out_spec,
        compiler_params=pltpu.CompilerParams(
            dimension_semantics=("parallel",)),
        cost_estimate=cost,
    )(x_t, *weights)

    return out[0, :B]    # .squeeze(1)


# ----------------------------- parameter setup --------------------------------
def _linear_init(key, fan_in, fan_out):
    kw, kb = jax.random.split(key)
    bound = 1.0 / np.sqrt(fan_in)
    w = jax.random.uniform(kw, (fan_in, fan_out), jnp.float32, -bound, bound)
    b = jax.random.uniform(kb, (1, fan_out), jnp.float32, -bound, bound)
    return w, b


def _fold_bn(w, b, eps=1e-5):
    # BatchNorm1d eval mode with running_mean=0, running_var=1, gamma=1, beta=0.
    scale = 1.0 / np.sqrt(1.0 + eps)
    return w * scale, b * scale


def make_raw_params(key, cfg):
    """Raw per-module parameters mirroring the PyTorch layers (all f32)."""
    field_dims = cfg["field_dims"]
    E = cfg["embed_dim"]
    F = len(field_dims)
    num_num = cfg["numerical_num"]
    b0, b1 = cfg["bottom_mlp_dims"]
    t0, t1 = cfg["tower_mlp_dims"]
    embed_out = (F + 2) * E

    keys = jax.random.split(key, 9)
    emb_table = 0.1 * jax.random.normal(keys[0], (int(np.sum(field_dims)), E), jnp.float32)
    w_num, b_num = _linear_init(keys[1], num_num, E)
    w_act, b_act = _linear_init(keys[2], 1, E)
    w_b0, b_b0 = _linear_init(keys[3], embed_out, b0)
    w_b1, b_b1 = _linear_init(keys[4], b0, b1)
    w_t0, b_t0 = _linear_init(keys[5], b1, t0)
    w_t1, b_t1 = _linear_init(keys[6], t0, t1)
    w_out, b_out = _linear_init(keys[7], t1, 1)
    return dict(emb_table=emb_table,
                w_num=w_num, b_num=b_num, w_act=w_act, b_act=b_act,
                w_b0=w_b0, b_b0=b_b0, w_b1=w_b1, b_b1=b_b1,
                w_t0=w_t0, b_t0=b_t0, w_t1=w_t1, b_t1=b_t1,
                w_out=w_out, b_out=b_out)


def prepare_kernel_params(raw, cfg):
    """Fold BN, fuse the num/act embedding linears into bottom layer 0, pad the
    fused input dim to a sublane multiple, transpose to feature-major, cast
    weights to bf16 (biases stay f32)."""
    F = len(cfg["field_dims"])
    E = cfg["embed_dim"]
    K_in = F * E + cfg["numerical_num"] + 1
    K_pad = _round_up(K_in, 8)

    w_b0, b_b0 = _fold_bn(raw["w_b0"], raw["b_b0"])
    w_b1, b_b1 = _fold_bn(raw["w_b1"], raw["b_b1"])
    w_t0, b_t0 = _fold_bn(raw["w_t0"], raw["b_t0"])
    w_t1, b_t1 = _fold_bn(raw["w_t1"], raw["b_t1"])

    # Split bottom-layer-0 weight along the concat axis, then fuse the
    # numerical/action Linear layers into it algebraically (offline).
    w_b0_cat = w_b0[: F * E]
    w_b0_num = w_b0[F * E: F * E + E]
    w_b0_act = w_b0[F * E + E:]
    w0_fused = jnp.concatenate(
        [w_b0_cat, raw["w_num"] @ w_b0_num, raw["w_act"] @ w_b0_act], axis=0)  # (K_in, b0)
    b0_fused = b_b0 + raw["b_num"] @ w_b0_num + raw["b_act"] @ w_b0_act
    if K_pad > K_in:   # zero rows matching the zero-padded input features
        w0_fused = jnp.pad(w0_fused, ((0, K_pad - K_in), (0, 0)))

    def wT(w):  # (in, out) -> (out, in), bf16 for the MXU
        return jnp.asarray(w.T, jnp.bfloat16)

    def bT(b):  # (1, out) -> (out, 1), kept f32 (bias/ReLU stay f32)
        return jnp.asarray(b.T, jnp.float32)

    return dict(
        emb_table=raw["emb_table"],
        w0=wT(w0_fused),     b0=bT(b0_fused),
        w1=wT(w_b1),         b1=bT(b_b1),
        wt0=wT(w_t0),        bt0=bT(b_t0),
        wt1=wT(w_t1),        bt1=bT(b_t1),
        wo=wT(raw["w_out"]), bo=bT(raw["b_out"]),
    )


# ----------------------------- references -------------------------------------
def critic_neg_ref_f32(categorical_x, numerical_x, action, raw, cfg):
    """Original (unfused) semantics in pure f32."""
    B = categorical_x.shape[0]
    F = len(cfg["field_dims"])
    E = cfg["embed_dim"]
    offsets = jnp.asarray(
        np.concatenate(([0], np.cumsum(cfg["field_dims"])[:-1])), jnp.int32)
    emb = jnp.take(raw["emb_table"], categorical_x + offsets[None, :],
                   axis=0).reshape(B, F * E)
    num_emb = numerical_x @ raw["w_num"] + raw["b_num"]
    act_emb = action @ raw["w_act"] + raw["b_act"]
    x = jnp.concatenate([emb, num_emb, act_emb], axis=1)

    def lyr(x, w, b):
        wf, bf = _fold_bn(w, b)
        return jax.nn.relu(x @ wf + bf)

    h = lyr(x, raw["w_b0"], raw["b_b0"])
    h = lyr(h, raw["w_b1"], raw["b_b1"])
    t = lyr(h, raw["w_t0"], raw["b_t0"])
    t = lyr(t, raw["w_t1"], raw["b_t1"])
    o = t @ raw["w_out"] + raw["b_out"]
    return (-jax.nn.relu(o))[:, 0]


def critic_neg_ref_quant(categorical_x, numerical_x, action, kparams, cfg):
    """Mirrors the kernel's fused + bf16-quantized math (tight check)."""
    x = _fused_input(categorical_x, numerical_x, action,
                     kparams["emb_table"], cfg).astype(jnp.bfloat16).T  # (K_pad, B)

    def layer(w, b, x):
        h = jnp.dot(w, x, preferred_element_type=jnp.float32) + b
        return jax.nn.relu(h).astype(jnp.bfloat16)

    h = layer(kparams["w0"], kparams["b0"], x)
    h = layer(kparams["w1"], kparams["b1"], h)
    t = layer(kparams["wt0"], kparams["bt0"], h)
    t = layer(kparams["wt1"], kparams["bt1"], t)
    o = jnp.dot(kparams["wo"], t, preferred_element_type=jnp.float32) + kparams["bo"]
    return (-jax.nn.relu(o))[0]


# ----------------------------- main --------------------------------------------
if __name__ == "__main__":
    cfg = dict(
        field_dims=(10, 20, 30),     # categorical_field_dims
        numerical_num=5,
        embed_dim=8,
        bottom_mlp_dims=(64, 32),
        tower_mlp_dims=(32, 16),
        dropout=0.2,                 # identity at inference
    )
    B = 8

    key = jax.random.PRNGKey(0)
    k_par, k_cat, k_num, k_act = jax.random.split(key, 4)

    raw = make_raw_params(k_par, cfg)
    kparams = prepare_kernel_params(raw, cfg)

    maxvals = jnp.asarray(cfg["field_dims"], jnp.int32)
    categorical_x = (
        jax.random.randint(k_cat, (B, len(cfg["field_dims"])), 0, 1_000_000) % maxvals
    ).astype(jnp.int32)
    numerical_x = jax.random.normal(k_num, (B, cfg["numerical_num"]), jnp.float32)
    action = jax.random.uniform(k_act, (B, 1), jnp.float32)

    out = critic_neg_forward(categorical_x, numerical_x, action, kparams, cfg)
    out = jax.block_until_ready(out)
    assert out.shape == (B,)

    # Tight check against a reference that mirrors the bf16 quantization.
    ref_q = critic_neg_ref_quant(categorical_x, numerical_x, action, kparams, cfg)
    np.testing.assert_allclose(np.asarray(out), np.asarray(ref_q), rtol=1e-2, atol=1e-2)

    # Looser check against the original unfused f32 semantics.
    ref_f = critic_neg_ref_f32(categorical_x, numerical_x, action, raw, cfg)
    np.testing.assert_allclose(np.asarray(out), np.asarray(ref_f), rtol=5e-2, atol=5e-2)

    print("KERNEL_OK")
</pallas_src>

<mosaic_0001>
module attributes {stable_mosaic.version = 11 : i64} {
  func.func @critic_neg_kernel(%arg0: i32, %arg1: memref<32x128xbf16, #tpu.memory_space<vmem>>, %arg2: memref<64x32xbf16, #tpu.memory_space<vmem>>, %arg3: memref<64x1xf32, #tpu.memory_space<vmem>>, %arg4: memref<32x64xbf16, #tpu.memory_space<vmem>>, %arg5: memref<32x1xf32, #tpu.memory_space<vmem>>, %arg6: memref<32x32xbf16, #tpu.memory_space<vmem>>, %arg7: memref<32x1xf32, #tpu.memory_space<vmem>>, %arg8: memref<16x32xbf16, #tpu.memory_space<vmem>>, %arg9: memref<16x1xf32, #tpu.memory_space<vmem>>, %arg10: memref<1x16xbf16, #tpu.memory_space<vmem>>, %arg11: memref<1x1xf32, #tpu.memory_space<vmem>>, %arg12: memref<1x128xf32, #tpu.memory_space<vmem>>) attributes {dimension_semantics = [#tpu.dimension_semantics<parallel>], iteration_bounds = array<i64: 1>, scalar_prefetch = 0 : i64, scratch_operands = 0 : i64, tpu.core_type = #tpu.core_type<tc>, window_params = [{transform_indices = @transform_0, window_bounds = array<i64: 32, 128>}, {pipeline_mode = #tpu.pipeline_mode<synchronous>, transform_indices = @transform_1, window_bounds = array<i64: 64, 32>}, {pipeline_mode = #tpu.pipeline_mode<synchronous>, transform_indices = @transform_2, window_bounds = array<i64: 64, 1>}, {pipeline_mode = #tpu.pipeline_mode<synchronous>, transform_indices = @transform_3, window_bounds = array<i64: 32, 64>}, {pipeline_mode = #tpu.pipeline_mode<synchronous>, transform_indices = @transform_4, window_bounds = array<i64: 32, 1>}, {pipeline_mode = #tpu.pipeline_mode<synchronous>, transform_indices = @transform_5, window_bounds = array<i64: 32, 32>}, {pipeline_mode = #tpu.pipeline_mode<synchronous>, transform_indices = @transform_6, window_bounds = array<i64: 32, 1>}, {pipeline_mode = #tpu.pipeline_mode<synchronous>, transform_indices = @transform_7, window_bounds = array<i64: 16, 32>}, {pipeline_mode = #tpu.pipeline_mode<synchronous>, transform_indices = @transform_8, window_bounds = array<i64: 16, 1>}, {pipeline_mode = #tpu.pipeline_mode<synchronous>, transform_indices = @transform_9, window_bounds = array<i64: 1, 16>}, {pipeline_mode = #tpu.pipeline_mode<synchronous>, transform_indices = @transform_10, window_bounds = array<i64: 1, 1>}, {transform_indices = @transform_11, window_bounds = array<i64: 1, 128>}]} {
    %c0 = arith.constant 0 : index
    %c0_0 = arith.constant 0 : index
    %0 = vector.load %arg1[%c0, %c0_0] : memref<32x128xbf16, #tpu.memory_space<vmem>>, vector<32x128xbf16>
    %c0_1 = arith.constant 0 : index
    %c0_2 = arith.constant 0 : index
    %1 = vector.load %arg2[%c0_1, %c0_2] : memref<64x32xbf16, #tpu.memory_space<vmem>>, vector<64x32xbf16>
    %cst = arith.constant dense<0.000000e+00> : vector<64x128xf32>
    %2 = tpu.matmul %1, %0, %cst {dimension_numbers = #tpu.dot_dimension_numbers<[1], [0], [0], [1], [0, 0, 1, 1], [], []>} : vector<64x32xbf16>, vector<32x128xbf16>, vector<64x128xf32> -> vector<64x128xf32>
    %c0_3 = arith.constant 0 : index
    %c0_4 = arith.constant 0 : index
    %3 = vector.load %arg3[%c0_3, %c0_4] : memref<64x1xf32, #tpu.memory_space<vmem>>, vector<64x1xf32>
    %4 = vector.broadcast %3 : vector<64x1xf32> to vector<64x128xf32>
    %5 = arith.addf %2, %4 : vector<64x128xf32>
    %cst_5 = arith.constant 0.000000e+00 : f32
    %6 = vector.broadcast %cst_5 : f32 to vector<64x128xf32>
    %7 = arith.maximumf %5, %6 : vector<64x128xf32>
    %8 = arith.truncf %7 : vector<64x128xf32> to vector<64x128xbf16>
    %c0_6 = arith.constant 0 : index
    %c0_7 = arith.constant 0 : index
    %9 = vector.load %arg4[%c0_6, %c0_7] : memref<32x64xbf16, #tpu.memory_space<vmem>>, vector<32x64xbf16>
    %cst_8 = arith.constant dense<0.000000e+00> : vector<32x128xf32>
    %10 = tpu.matmul %9, %8, %cst_8 {dimension_numbers = #tpu.dot_dimension_numbers<[1], [0], [0], [1], [0, 0, 1, 1], [], []>} : vector<32x64xbf16>, vector<64x128xbf16>, vector<32x128xf32> -> vector<32x128xf32>
    %c0_9 = arith.constant 0 : index
    %c0_10 = arith.constant 0 : index
    %11 = vector.load %arg5[%c0_9, %c0_10] : memref<32x1xf32, #tpu.memory_space<vmem>>, vector<32x1xf32>
    %12 = vector.broadcast %11 : vector<32x1xf32> to vector<32x128xf32>
    %13 = arith.addf %10, %12 : vector<32x128xf32>
    %cst_11 = arith.constant 0.000000e+00 : f32
    %14 = vector.broadcast %cst_11 : f32 to vector<32x128xf32>
    %15 = arith.maximumf %13, %14 : vector<32x128xf32>
    %16 = arith.truncf %15 : vector<32x128xf32> to vector<32x128xbf16>
    %c0_12 = arith.constant 0 : index
    %c0_13 = arith.constant 0 : index
    %17 = vector.load %arg6[%c0_12, %c0_13] : memref<32x32xbf16, #tpu.memory_space<vmem>>, vector<32x32xbf16>
    %cst_14 = arith.constant dense<0.000000e+00> : vector<32x128xf32>
    %18 = tpu.matmul %17, %16, %cst_14 {dimension_numbers = #tpu.dot_dimension_numbers<[1], [0], [0], [1], [0, 0, 1, 1], [], []>} : vector<32x32xbf16>, vector<32x128xbf16>, vector<32x128xf32> -> vector<32x128xf32>
    %c0_15 = arith.constant 0 : index
    %c0_16 = arith.constant 0 : index
    %19 = vector.load %arg7[%c0_15, %c0_16] : memref<32x1xf32, #tpu.memory_space<vmem>>, vector<32x1xf32>
    %20 = vector.broadcast %19 : vector<32x1xf32> to vector<32x128xf32>
    %21 = arith.addf %18, %20 : vector<32x128xf32>
    %cst_17 = arith.constant 0.000000e+00 : f32
    %22 = vector.broadcast %cst_17 : f32 to vector<32x128xf32>
    %23 = arith.maximumf %21, %22 : vector<32x128xf32>
    %24 = arith.truncf %23 : vector<32x128xf32> to vector<32x128xbf16>
    %c0_18 = arith.constant 0 : index
    %c0_19 = arith.constant 0 : index
    %25 = vector.load %arg8[%c0_18, %c0_19] : memref<16x32xbf16, #tpu.memory_space<vmem>>, vector<16x32xbf16>
    %cst_20 = arith.constant dense<0.000000e+00> : vector<16x128xf32>
    %26 = tpu.matmul %25, %24, %cst_20 {dimension_numbers = #tpu.dot_dimension_numbers<[1], [0], [0], [1], [0, 0, 1, 1], [], []>} : vector<16x32xbf16>, vector<32x128xbf16>, vector<16x128xf32> -> vector<16x128xf32>
    %c0_21 = arith.constant 0 : index
    %c0_22 = arith.constant 0 : index
    %27 = vector.load %arg9[%c0_21, %c0_22] : memref<16x1xf32, #tpu.memory_space<vmem>>, vector<16x1xf32>
    %28 = vector.broadcast %27 : vector<16x1xf32> to vector<16x128xf32>
    %29 = arith.addf %26, %28 : vector<16x128xf32>
    %cst_23 = arith.constant 0.000000e+00 : f32
    %30 = vector.broadcast %cst_23 : f32 to vector<16x128xf32>
    %31 = arith.maximumf %29, %30 : vector<16x128xf32>
    %32 = arith.truncf %31 : vector<16x128xf32> to vector<16x128xbf16>
    %c0_24 = arith.constant 0 : index
    %c0_25 = arith.constant 0 : index
    %33 = vector.load %arg10[%c0_24, %c0_25] : memref<1x16xbf16, #tpu.memory_space<vmem>>, vector<1x16xbf16>
    %cst_26 = arith.constant dense<0.000000e+00> : vector<1x128xf32>
    %34 = tpu.matmul %33, %32, %cst_26 {dimension_numbers = #tpu.dot_dimension_numbers<[1], [0], [0], [1], [0, 0, 1, 1], [], []>} : vector<1x16xbf16>, vector<16x128xbf16>, vector<1x128xf32> -> vector<1x128xf32>
    %c0_27 = arith.constant 0 : index
    %c0_28 = arith.constant 0 : index
    %35 = vector.load %arg11[%c0_27, %c0_28] : memref<1x1xf32, #tpu.memory_space<vmem>>, vector<1x1xf32>
    %36 = vector.broadcast %35 : vector<1x1xf32> to vector<1x128xf32>
    %37 = arith.addf %34, %36 : vector<1x128xf32>
    %cst_29 = arith.constant 0.000000e+00 : f32
    %38 = vector.broadcast %cst_29 : f32 to vector<1x128xf32>
    %39 = arith.maximumf %37, %38 : vector<1x128xf32>
    %cst_30 = arith.constant 0.000000e+00 : f32
    %40 = vector.broadcast %cst_30 : f32 to vector<1x128xf32>
    %41 = arith.subf %40, %39 : vector<1x128xf32>
    %c0_31 = arith.constant 0 : index
    %c0_32 = arith.constant 0 : index
    %42 = vector.load %arg12[%c0_31, %c0_32] : memref<1x128xf32, #tpu.memory_space<vmem>>, vector<1x128xf32>
    tpu.vector_store %arg12[%c0_31, %c0_32], %41 {strides = array<i32>} : memref<1x128xf32, #tpu.memory_space<vmem>>, vector<1x128xf32>,
    return
  }
  func.func @transform_0(%arg0: i32) -> (i32, i32) {
    %c0_i32 = arith.constant 0 : i32
    %c0_i32_0 = arith.constant 0 : i32
    return %c0_i32, %arg0 : i32, i32
  }
  func.func @transform_1(%arg0: i32) -> (i32, i32) {
    %c0_i32 = arith.constant 0 : i32
    %c0_i32_0 = arith.constant 0 : i32
    %c0_i32_1 = arith.constant 0 : i32
    return %c0_i32, %c0_i32_0 : i32, i32
  }
  func.func @transform_2(%arg0: i32) -> (i32, i32) {
    %c0_i32 = arith.constant 0 : i32
    %c0_i32_0 = arith.constant 0 : i32
    %c0_i32_1 = arith.constant 0 : i32
    return %c0_i32, %c0_i32_0 : i32, i32
  }
  func.func @transform_3(%arg0: i32) -> (i32, i32) {
    %c0_i32 = arith.constant 0 : i32
    %c0_i32_0 = arith.constant 0 : i32
    %c0_i32_1 = arith.constant 0 : i32
    return %c0_i32, %c0_i32_0 : i32, i32
  }
  func.func @transform_4(%arg0: i32) -> (i32, i32) {
    %c0_i32 = arith.constant 0 : i32
    %c0_i32_0 = arith.constant 0 : i32
    %c0_i32_1 = arith.constant 0 : i32
    return %c0_i32, %c0_i32_0 : i32, i32
  }
  func.func @transform_5(%arg0: i32) -> (i32, i32) {
    %c0_i32 = arith.constant 0 : i32
    %c0_i32_0 = arith.constant 0 : i32
    %c0_i32_1 = arith.constant 0 : i32
    return %c0_i32, %c0_i32_0 : i32, i32
  }
  func.func @transform_6(%arg0: i32) -> (i32, i32) {
    %c0_i32 = arith.constant 0 : i32
    %c0_i32_0 = arith.constant 0 : i32
    %c0_i32_1 = arith.constant 0 : i32
    return %c0_i32, %c0_i32_0 : i32, i32
  }
  func.func @transform_7(%arg0: i32) -> (i32, i32) {
    %c0_i32 = arith.constant 0 : i32
    %c0_i32_0 = arith.constant 0 : i32
    %c0_i32_1 = arith.constant 0 : i32
    return %c0_i32, %c0_i32_0 : i32, i32
  }
  func.func @transform_8(%arg0: i32) -> (i32, i32) {
    %c0_i32 = arith.constant 0 : i32
    %c0_i32_0 = arith.constant 0 : i32
    %c0_i32_1 = arith.constant 0 : i32
    return %c0_i32, %c0_i32_0 : i32, i32
  }
  func.func @transform_9(%arg0: i32) -> (i32, i32) {
    %c0_i32 = arith.constant 0 : i32
    %c0_i32_0 = arith.constant 0 : i32
    %c0_i32_1 = arith.constant 0 : i32
    return %c0_i32, %c0_i32_0 : i32, i32
  }
  func.func @transform_10(%arg0: i32) -> (i32, i32) {
    %c0_i32 = arith.constant 0 : i32
    %c0_i32_0 = arith.constant 0 : i32
    %c0_i32_1 = arith.constant 0 : i32
    return %c0_i32, %c0_i32_0 : i32, i32
  }
  func.func @transform_11(%arg0: i32) -> (i32, i32) {
    %c0_i32 = arith.constant 0 : i32
    %c0_i32_0 = arith.constant 0 : i32
    return %c0_i32, %arg0 : i32, i32
  }
}

</mosaic_0001>

<bundles_post_ra>
// kernel: tpu_custom_call.1
= control target key start
LH: loop header
LB: loop body
LE: loop exit
PB: predicated region body
PF: predicated region fallthrough
CT: control target
= control target key end

     0   :  { %s868_s0 = inlined_call_operand.vmem [shape: bf16[32,128], index: 0, kind: input, shape index: {}]   ;;  %s869_s1 = inlined_call_operand.vmem [shape: bf16[64,32], index: 1, kind: input, shape index: {}]   ;;  %s870_s2 = inlined_call_operand.vmem [shape: f32[64,1], index: 2, kind: input, shape index: {}]   ;;  %s871_s3 = inlined_call_operand.vmem [shape: bf16[32,64], index: 3, kind: input, shape index: {}]   ;;  %s872_s4 = inlined_call_operand.vmem [shape: f32[32,1], index: 4, kind: input, shape index: {}]   ;;  %s873_s5 = inlined_call_operand.vmem [shape: bf16[32,32], index: 5, kind: input, shape index: {}]   ;;  %s874_s6 = inlined_call_operand.vmem [shape: f32[32,1], index: 6, kind: input, shape index: {}]   ;;  %s875_s7 = inlined_call_operand.vmem [shape: bf16[16,32], index: 7, kind: input, shape index: {}]   ;;  %s876_s8 = inlined_call_operand.vmem [shape: f32[16,1], index: 8, kind: input, shape index: {}]   ;;  %s877_s9 = inlined_call_operand.vmem [shape: bf16[1,16], index: 9, kind: input, shape index: {}]   ;;  %s878_s10 = inlined_call_operand.<no memory space> [shape: f32[1,1], index: 10, kind: input, shape index: {}]   ;;  %s879_s11 = inlined_call_operand.hbm [shape: f32[1,128], index: 11, kind: output, shape index: {}]  }
   0x1   :  { %v16_v0 = vstv %s878_s10 }
   0x2   :  { %17 = vst [vmem:[#allocation2] sm:$0x1] %v16_v0 }
   0x3   :  { %v655_v1 = vld [vmem:[%s868_s0] sm:$0xff]   ;;  %vm134_vm0 = vcmask 261120   ;;  %v656_v2 = vld [vmem:[%s868_s0 + $0x8] sm:$0xff]   ;;  %v690_v4 = vmov 0   ;;  %v56_v7 = vld [vmem:[%s870_s2 + $0x10] sm:$0xff] }
   0x4   :  { %603 = vmatprep.subr.bf16.mxu0 %v655_v1  ;;  %v657_v3 = vld [vmem:[%s869_s1] sm:$0xff]   ;;  %653 = vset.pattern.permute.xlu0 %v690_v4  ;;  %v658_v5 = vld [vmem:[%s869_s1 + $0x8] sm:$0xff]   ;;  %v659_v8 = vld [vmem:[%s869_s1 + $0x10] sm:$0xff]  }
   0x5   :  { %604 = vmatpush3.bf16.msra.mxu0 %v655_v1  ;;  %654 = vset.pattern.permute.xlu1 %v690_v4  ;;  %v54_v6 = vld [vmem:[%s870_s2] sm:$0xff]  ;;  %v55_v9 = vld [vmem:[%s870_s2 + $0x8] sm:$0xff]  ;;  %v57_v10 = vld [vmem:[%s870_s2 + $0x18] sm:$0xff] }
   0x6   :  { %605 = vmatprep.subr.bf16.mxu0 %v656_v2  ;;  %607 = vmatprep.mubr.msk.bf16.mxu0 %vm134_vm0, %v657_v3  ;;  %v58_v11 = vld [vmem:[%s870_s2 + $0x20] sm:$0xff]  ;;  %v660_v12 = vld [vmem:[%s869_s1 + $0x18] sm:$0xff]   ;;  %v59_v13 = vld [vmem:[%s870_s2 + $0x28] sm:$0xff] }
   0x7   :  { %64 = vperm.xlu0 %653, %v54_v6   ;;  %74 = vperm.xlu1 %654, %v56_v7  }
   0x9   :  { %606 = vmatpush3.bf16.msra.mxu0 %v656_v2 }
   0xb   :  { %69 = vperm.xlu0 %653, %v55_v9   ;;  %79 = vperm.xlu1 %654, %v57_v10  }
   0xc   :  { %608 = vmatmul.mubr.msk.bf16.vlgmr.msra.gmra.mrb[0].mxu0 %vm134_vm0, %v658_v5 }
   0xd   :  { %611 = vmatprep.mubr.msk.bf16.mxu0 %vm134_vm0, %v659_v8 }
   0xf   :  { %84 = vperm.xlu0 %653, %v58_v11  }
  0x10   :  { %18 = vsyncpa [#allocation4], 0  ;;  %v60_v14 = vld [vmem:[%s870_s2 + $0x30] sm:$0xff]  ;;  %89 = vperm.xlu1 %654, %v59_v13   ;;  %v61_v15 = vld [vmem:[%s870_s2 + $0x38] sm:$0xff]  ;;  %vm262_vm1 = vcmask 523264   ;;  %vm692_vm2 = vmmov 0  }
  0x11   :  { %v228_v16 = vld [vmem:[%s872_s4] sm:$0xff]  ;;  %v229_v17 = vld [vmem:[%s872_s4 + $0x8] sm:$0xff]  ;;  %v230_v18 = vld [vmem:[%s872_s4 + $0x10] sm:$0xff]  ;;  %vm500_vm3 = vcmask 130048  }
  0x12   :  { %v231_v19 = vld [vmem:[%s872_s4 + $0x18] sm:$0xff]  ;;  %v328_v20 = vld [vmem:[%s874_s6] sm:$0xff]  ;;  %v329_v21 = vld [vmem:[%s874_s6 + $0x8] sm:$0xff] }
  0x13   :  { %94 = vperm.xlu0 %653, %v60_v14   ;;  %v330_v22 = vld [vmem:[%s874_s6 + $0x10] sm:$0xff]  ;;  %v331_v23 = vld [vmem:[%s874_s6 + $0x18] sm:$0xff]  ;;  %v425_v24 = vld [vmem:[%s876_s8] sm:$0xff] }
  0x14   :  { %612 = vmatmul.mubr.msk.bf16.gmra.mrb[4].mxu0 %vm134_vm0, %v660_v12  ;;  %99 = vperm.xlu1 %654, %v61_v15   ;;  %v426_v25 = vld [vmem:[%s876_s8 + $0x8] sm:$0xff]  ;;  %v490_v26 = vld [vmem:[#allocation2] sm:$0x1] }
  0x15   :  { %v661_v27 = vld [vmem:[%s871_s3] sm:$0xff]   ;;  %v662_v0 = vld [vmem:[%s871_s3 + $0x8] sm:$0xff]  }
  0x16   :  { %623 = vmatprep.mubr.msk.bf16.mxu1 %vm262_vm1, %v661_v27  ;;  %v663_v1 = vld [vmem:[%s873_s5] sm:$0xff]  }
  0x17   :  { %234 = vperm.xlu0 %653, %v228_v16   ;;  %631 = vmatprep.mubr.msk.bf16.mxu0 %vm134_vm0, %v663_v1 }
  0x18   :  { %239 = vperm.xlu1 %654, %v229_v17  }
  0x1b   :  { %244 = vperm.xlu0 %653, %v230_v18  }
  0x1c   :  { %249 = vperm.xlu1 %654, %v231_v19  }
  0x1f   :  { %334 = vperm.xlu0 %653, %v328_v20   ;;  %v664_v20 = vld [vmem:[%s873_s5 + $0x8] sm:$0xff]  }
  0x20   :  { %339 = vperm.xlu1 %654, %v329_v21   ;;  %v691_v21 = vmov 0.0  }
  0x23   :  { %344 = vperm.xlu0 %653, %v330_v22  }
  0x24   :  { %349 = vperm.xlu1 %654, %v331_v23  }
  0x27   :  { %429 = vperm.xlu0 %653, %v425_v24  }
  0x28   :  { %434 = vperm.xlu1 %654, %v426_v25  }
  0x2b   :  { %493 = vperm.xlu0 %653, %v490_v26  }
  0x86   :  { %v65_v28 = vpop.permute.xlu0 %64  ;;  %v75_v29 = vpop.permute.xlu1 %74 }
  0x8a   :  { %v70_v30 = vpop.permute.xlu0 %69  ;;  %v80_v31 = vpop.permute.xlu1 %79 }
  0x8e   :  { %v85_v35 = vpop.permute.xlu0 %84 }
  0x8f   :  { %v90_v40 = vpop.permute.xlu1 %89 }
  0x92   :  { %v95_v47 = vpop.permute.xlu0 %94 }
  0x93   :  { %v100_v52 = vpop.permute.xlu1 %99 }
  0x96   :  { %v235_v2 = vpop.permute.xlu0 %234 }
  0x97   :  { %v240_v3 = vpop.permute.xlu1 %239 }
  0x9a   :  { %v245_v4 = vpop.permute.xlu0 %244 }
  0x9b   :  { %v250_v8 = vpop.permute.xlu1 %249 }
  0x9e   :  { %v335_v22 = vpop.permute.xlu0 %334 }
  0x9f   :  { %v340_v23 = vpop.permute.xlu1 %339 }
  0xa2   :  { %v345_v24 = vpop.permute.xlu0 %344 }
  0xdf   :  { %v609_v32 = vpop.f32.mrb[0].mxu0 }
  0xe0   :  { %v190_v33 = vadd.f32 %v609_v32, %v75_v29  ;;  %v181_v34 = vpop.f32.mrb[1].mxu0 }
  0xe1   :  { %v182_v36 = vadd.f32 %v181_v34, %v65_v28  ;;  %v610_v37 = vpop.f32.mrb[2].mxu0  ;;  %v350_v28 = vpop.permute.xlu1 %349 }
  0xe2   :  { %v193_v38 = vadd.f32 %v610_v37, %v80_v31  ;;  %v184_v39 = vpop.f32.mrb[3].mxu0  ;;  %v214_v42 = vmax.f32 %v190_v33, 0.0 }
  0xe3   :  { %v185_v41 = vadd.f32 %v184_v39, %v70_v30  ;;  %v212_v44 = vmax.f32 %v182_v36, 0.0 }
  0xe4   :  { %v215_v43 = vmax.f32 %v193_v38, 0.0 }
  0xe5   :  { %v213_v45 = vmax.f32 %v185_v41, 0.0  ;;  %v430_v41 = vpop.permute.xlu0 %429 }
  0xe6   :  { %v221_v46 = vpack.c.bf16 %v215_v43, %v214_v42 }
  0xe7   :  { %v613_v48 = vpop.f32.mrb[4].mxu0  ;;  %v220_v49 = vpack.c.bf16 %v213_v45, %v212_v44  ;;  %v435_v45 = vpop.permute.xlu1 %434 }
  0xe8   :  { %v206_v50 = vadd.f32 %v613_v48, %v95_v47  ;;  %v197_v51 = vpop.f32.mrb[5].mxu0 }
  0xe9   :  { %v198_v53 = vadd.f32 %v197_v51, %v85_v35  ;;  %v614_v54 = vpop.f32.mrb[6].mxu0  ;;  %615 = vmatprep.subr.bf16.mxu1 %v220_v49 }
  0xea   :  { %v209_v55 = vadd.f32 %v614_v54, %v100_v52  ;;  %v200_v56 = vpop.f32.mrb[7].mxu0  ;;  %616 = vmatpush3.bf16.msra.mxu1 %v220_v49  ;;  %v218_v58 = vmax.f32 %v206_v50, 0.0  ;;  %v489_v52 = vld [vmem:[%s877_s9] sm:$0x1] }
  0xeb   :  { %v201_v57 = vadd.f32 %v200_v56, %v90_v40  ;;  %617 = vmatprep.subr.bf16.mxu1 %v221_v46  ;;  %v216_v60 = vmax.f32 %v198_v53, 0.0  ;;  %v665_v40 = vld [vmem:[%s875_s7] sm:$0xff]   ;;  %v496_v53 = vlaneseq  ;;  %v494_v56 = vpop.permute.xlu0 %493  ;;  %s693_s7 = smov [#allocation3]  }
  0xec   :  { %v219_v59 = vmax.f32 %v209_v55, 0.0  ;;  %s553_s0 = sshll.u32 %s693_s7, 4  ;;  %s554_s0 = int_to_ptr.vmem [resolvable:$true] %s553_s0 }
  0xed   :  { %v217_v61 = vmax.f32 %v201_v57, 0.0  ;;  %v497_v54 = vshrl.u32 %v496_v53, 7  ;;  %s666_s28 = scalar_lea.vmem %s554_s0, 16  ;;  %s670_s9 = scalar_lea.vmem %s554_s0, 32 }
  0xee   :  { %v223_v62 = vpack.c.bf16 %v219_v59, %v218_v58  ;;  %618 = vmatpush3.bf16.msra.mxu1 %v221_v46  ;;  %p667_p0 = scmp.ne.s32.totalorder %s554_s0, %s666_s28  ;;  %p671_p1 = scmp.lt.s32.totalorder %s554_s0, %s554_s0 }
  0xef   :  { %v222_v63 = vpack.c.bf16 %v217_v61, %v216_v60  ;;  %v498_v55 = vsub.s32 0, %v497_v54  ;;  %p672_p2 = scmp.lt.s32.totalorder %s670_s9, %s666_s28 }
  0xf1   :  { %619 = vmatprep.subr.bf16.mxu1 %v222_v63  ;;  %v499_v57 = vrot.slane %v494_v56, %v498_v55  ;;  %p673_p3 = por %p672_p2, %p671_p1 }
  0xf2   :  { %620 = vmatpush3.bf16.msra.mxu1 %v222_v63 }
  0xf3   :  { %621 = vmatprep.subr.bf16.mxu1 %v223_v62  ;;  %p674_p4 = pnand %p673_p3, %p667_p0 }
  0xf6   :  { %622 = vmatpush3.bf16.msra.mxu1 %v223_v62 }
  0xf7   :  { %635 = vmatprep.subr.bf16.mxu1 %v691_v21 }
  0xf9   :  { %624 = vmatmul.mubr.msk.bf16.vlgmr.msra.gmra.mrb[0].mxu1 %vm262_vm1, %v662_v0 }
  0xfa   :  { %639 = vmatprep.mubr.msk.bf16.mxu1 %vm692_vm2, %v691_v21 }
 0x1cc   :  { %v625_v5 = vpop.f32.mrb[0].mxu1 }
 0x1cd   :  { %v312_v6 = vadd.f32 %v625_v5, %v245_v4  ;;  %v303_v7 = vpop.f32.mrb[1].mxu1 }
 0x1ce   :  { %v304_v9 = vadd.f32 %v303_v7, %v235_v2  ;;  %v626_v10 = vpop.f32.mrb[2].mxu1 }
 0x1cf   :  { %v315_v11 = vadd.f32 %v626_v10, %v250_v8  ;;  %v306_v12 = vpop.f32.mrb[3].mxu1  ;;  %v320_v14 = vmax.f32 %v312_v6, 0.0 }
 0x1d0   :  { %v307_v13 = vadd.f32 %v306_v12, %v240_v3  ;;  %v318_v16 = vmax.f32 %v304_v9, 0.0 }
 0x1d1   :  { %v321_v15 = vmax.f32 %v315_v11, 0.0 }
 0x1d2   :  { %v319_v17 = vmax.f32 %v307_v13, 0.0 }
 0x1d3   :  { %v323_v18 = vpack.c.bf16 %v321_v15, %v320_v14 }
 0x1d4   :  { %v322_v19 = vpack.c.bf16 %v319_v17, %v318_v16 }
 0x1d6   :  { %627 = vmatprep.subr.bf16.mxu0 %v322_v19 }
 0x1d7   :  { %628 = vmatpush3.bf16.msra.mxu0 %v322_v19 }
 0x1d8   :  { %629 = vmatprep.subr.bf16.mxu0 %v323_v18 }
 0x1db   :  { %630 = vmatpush3.bf16.msra.mxu0 %v323_v18 }
 0x1dc   :  { %643 = vmatprep.subr.bf16.mxu0 %v691_v21 }
 0x1de   :  { %632 = vmatmul.mubr.msk.bf16.vlgmr.msra.gmra.mrb[8].mxu0 %vm134_vm0, %v664_v20 }
 0x1df   :  { %645 = vmatprep.mubr.msk.bf16.mxu0 %vm692_vm2, %v691_v21 }
 0x2b1   :  { %v633_v25 = vpop.f32.mrb[8].mxu0 }
 0x2b2   :  { %v411_v26 = vadd.f32 %v633_v25, %v345_v24  ;;  %v402_v27 = vpop.f32.mrb[9].mxu0 }
 0x2b3   :  { %v403_v29 = vadd.f32 %v402_v27, %v335_v22  ;;  %v634_v30 = vpop.f32.mrb[10].mxu0 }
 0x2b4   :  { %v414_v31 = vadd.f32 %v634_v30, %v350_v28  ;;  %v405_v32 = vpop.f32.mrb[11].mxu0  ;;  %v419_v34 = vmax.f32 %v411_v26, 0.0 }
 0x2b5   :  { %v406_v33 = vadd.f32 %v405_v32, %v340_v23  ;;  %v417_v36 = vmax.f32 %v403_v29, 0.0 }
 0x2b6   :  { %v420_v35 = vmax.f32 %v414_v31, 0.0 }
 0x2b7   :  { %v418_v37 = vmax.f32 %v406_v33, 0.0 }
 0x2b8   :  { %v422_v38 = vpack.c.bf16 %v420_v35, %v419_v34 }
 0x2b9   :  { %v421_v39 = vpack.c.bf16 %v418_v37, %v417_v36 }
 0x2bb   :  { %636 = vmatpush3.bf16.msra.mxu1 %v421_v39 }
 0x2bc   :  { %637 = vmatprep.subr.bf16.mxu1 %v691_v21 }
 0x2bf   :  { %638 = vmatpush3.bf16.msra.mxu1 %v422_v38 }
 0x2c2   :  { %640 = vmatmul.mubr.msk.bf16.vlgmr.msra.gmra.mrb[4].mxu1 %vm134_vm0, %v665_v40 }
 0x395   :  { %v479_v42 = vpop.f32.mrb[4].mxu1 }
 0x396   :  { %v480_v43 = vadd.f32 %v479_v42, %v430_v41  ;;  %v641_v44 = vpop.f32.mrb[5].mxu1 }
 0x397   :  { %v482_v46 = vpop.f32.mrb[6].mxu1 }
 0x398   :  { %v483_v47 = vadd.f32 %v482_v46, %v435_v45  ;;  %v642_v48 = vpop.f32.mrb[7].mxu1  ;;  %v486_v49 = vmax.f32 %v480_v43, 0.0 }
 0x39a   :  { %v487_v50 = vmax.f32 %v483_v47, 0.0 }
 0x39c   :  { %v488_v51 = vpack.c.bf16 %v487_v50, %v486_v49 }
 0x39e   :  { %644 = vmatpush3.bf16.msra.mxu0 %v488_v51 }
 0x3a1   :  { %646 = vmatmul.mubr.msk.bf16.vlgmr.msra.gmra.mrb[12].mxu0 %vm500_vm3, %v489_v52 }
 0x474   :  { %v538_v58 = vpop.f32.mrb[12].mxu0 }
 0x475   :  { %v539_v59 = vadd.f32 %v538_v58, %v499_v57  ;;  %v647_v60 = vpop.f32.mrb[13].mxu0 }
 0x476   :  { %v541_v61 = vpop.f32.mrb[14].mxu0 }
 0x477   :  { %v544_v62 = vmax.f32 %v539_v59, 0.0  ;;  %v648_v63 = vpop.f32.mrb[15].mxu0 }
 0x479   :  { %v545_v0 = vsub.f32 0.0, %v544_v62 }
 0x47b   :  { %546 = vst [vmem:[#allocation3] sm:$0x1] %v545_v0 }
 0x47c   :  { %677 = shalt.err (!%p674_p4)
}
 0x47d   :  { %s678_s30 = scalar_lea.hbm %s879_s11, 16 }
 0x47e   :  { %p679_p5 = scmp.ne.s32.totalorder %s879_s11, %s678_s30  ;;  %p682_p6 = scmp.lt.u32.totalorder %s678_s30, %s879_s11 }
 0x480   :  { %p684_p7 = pnand %p682_p6, %p679_p5 }
 0x482   :  { %687 = shalt.err (!%p684_p7)
}
 0x483   :  { %556 = dma.vmem_to_hbm [thread:$0]  %s554_s0, 16, %s879_s11, [#allocation4]  }
 0x484   :  { %688 = dma.done.wait [#allocation4], 16  }
 0x485   :  { %689 = vsyncadd [#allocation4], 4294967280 }
 0x486   :  { %560 = vsyncpa [#allocation4], 1 }

</bundles_post_ra>
